<compile_context>
chip_gen: v6e
topology: v6e:2x2x1
jax: 0.10.0
libtpu: 0.0.40
codegen_flags: <defaults>
</compile_context>

<pallas_src>
import jax
import jax.numpy as jnp
from jax import lax
from jax.experimental import pallas as pl
from jax.experimental.pallas import tpu as pltpu


# Packed parameter layout (PyTorch nn.Linear layout, row-major flatten):
#   W1 (8,2) -> p[0:16]   b1 (8,) -> p[16:24]
#   W2 (4,8) -> p[24:56]  b2 (4,) -> p[56:60]
#   W3 (1,4) -> p[60:64]  b3 (1,) -> p[64]
_W1_OFF, _B1_OFF = 0, 16
_W2_OFF, _B2_OFF = 24, 56
_W3_OFF, _B3_OFF = 60, 64
_P_LEN = 65
_SUB = 8      # sublane chunk height processed per inner-loop iteration


def _mlp_kernel(p_ref, x_ref, o_ref):
    # p_ref: (65,) f32 in SMEM.
    # x_ref: (2, rows, C) f32 in VMEM  (feature, row, lane), batch on rows*lanes.
    # o_ref: (rows, C) f32 in VMEM.
    rows = x_ref.shape[1]
    n_chunks = rows // _SUB            # static

    # Hoist all 65 scalar parameter reads out of the loop (one-time SMEM loads).
    w1 = [[p_ref[_W1_OFF + 2 * j + k] for k in range(2)] for j in range(8)]
    b1 = [p_ref[_B1_OFF + j] for j in range(8)]
    w2 = [[p_ref[_W2_OFF + 8 * i + j] for j in range(8)] for i in range(4)]
    b2 = [p_ref[_B2_OFF + i] for i in range(4)]
    w3 = [p_ref[_W3_OFF + k] for k in range(4)]
    b3 = p_ref[_B3_OFF]

    def chunk_body(c, carry):
        r0 = pl.multiple_of(c * _SUB, _SUB)
        x0 = x_ref[0, pl.ds(r0, _SUB), :]          # (8, C) vreg-dense slab
        x1 = x_ref[1, pl.ds(r0, _SUB), :]          # (8, C)

        # Layer 1 (2->8, ReLU) folded immediately into layer-2 accumulators so
        # only ~9 slabs are live at once (x0, x1, h1_j, 4 accumulators, out).
        h2 = [None] * 4
        for j in range(8):
            h1_j = jnp.maximum(x0 * w1[j][0] + x1 * w1[j][1] + b1[j], 0.0)
            for i in range(4):
                t = h1_j * w2[i][j]
                h2[i] = t if h2[i] is None else h2[i] + t

        # Layer 2 bias + ReLU, layer 3 (4->1).
        out = None
        for i in range(4):
            t = jnp.maximum(h2[i] + b2[i], 0.0) * w3[i]
            out = t if out is None else out + t
        out = out + b3

        o_ref[pl.ds(r0, _SUB), :] = out.astype(o_ref.dtype)   # unmasked store
        return carry

    lax.fori_loop(0, n_chunks, chunk_body, 0, unroll=False)


def model_a_forward(x, params, *, lane_width=512, rows_per_step=64):
    """x: (B, 2) float32.  params: PyTorch-layout weights:
       w1 (8,2), b1 (8,), w2 (4,8), b2 (4,), w3 (1,4), b3 (1,)."""
    x = jnp.asarray(x, jnp.float32)
    B = x.shape[0]
    assert x.shape[1] == 2

    # Pack all parameters into one flat SMEM vector.
    p = jnp.concatenate([
        params["w1"].reshape(-1), params["b1"].reshape(-1),
        params["w2"].reshape(-1), params["b2"].reshape(-1),
        params["w3"].reshape(-1), params["b3"].reshape(-1),
    ]).astype(jnp.float32)
    assert p.shape == (_P_LEN,)

    # Layout geometry: lane width C (multiple of 128), rows multiple of 8.
    C = max(128, (int(lane_width) // 128) * 128)
    R8 = pl.cdiv(B, C * _SUB) * _SUB                       # rows covering B
    rps = max(_SUB, min((int(rows_per_step) // _SUB) * _SUB, R8))
    # v7x megacore: prefer >= 2 grid steps so "parallel" can shard across TCs.
    if R8 // rps < 2 and R8 >= 2 * _SUB:
        rps = max(_SUB, ((R8 // 2) // _SUB) * _SUB)
    R = pl.cdiv(R8, rps) * rps
    Bp = R * C

    # (B,2) -> (2,Bp) (one fused transpose+pad pass) -> free reshape to (2,R,C).
    xt = jnp.pad(x.T, ((0, 0), (0, Bp - B))).reshape(2, R, C)

    out = pl.pallas_call(
        _mlp_kernel,
        out_shape=jax.ShapeDtypeStruct((R, C), jnp.float32),
        grid=(R // rps,),
        in_specs=[
            pl.BlockSpec(memory_space=pltpu.MemorySpace.SMEM),   # packed params
            pl.BlockSpec((2, rps, C), lambda i: (0, i, 0)),      # x tile
        ],
        out_specs=pl.BlockSpec((rps, C), lambda i: (i, 0)),
        compiler_params=pltpu.CompilerParams(
            dimension_semantics=("parallel",),        # shard batch over TCs
        ),
    )(p, xt)

    # Row-major (R, C) is exactly sample order: free reshape + small slice.
    return out.reshape(-1)[:B].reshape(B, 1)


def init_params(key):
    """Deterministic synthetic init, PyTorch nn.Linear shapes (out, in) / (out,)."""
    k1, k2, k3, k4, k5, k6 = jax.random.split(key, 6)
    return {
        "w1": jax.random.uniform(k1, (8, 2), jnp.float32, -0.5, 0.5),
        "b1": jax.random.uniform(k2, (8,), jnp.float32, -0.5, 0.5),
        "w2": jax.random.uniform(k3, (4, 8), jnp.float32, -0.5, 0.5),
        "b2": jax.random.uniform(k4, (4,), jnp.float32, -0.5, 0.5),
        "w3": jax.random.uniform(k5, (1, 4), jnp.float32, -0.5, 0.5),
        "b3": jax.random.uniform(k6, (1,), jnp.float32, -0.5, 0.5),
    }


def _ref_forward(x, p):
    h1 = jnp.maximum(x @ p["w1"].T + p["b1"], 0.0)
    h2 = jnp.maximum(h1 @ p["w2"].T + p["b2"], 0.0)
    return h2 @ p["w3"].T + p["b3"]


if __name__ == "__main__":
    key = jax.random.PRNGKey(0)
    kx, kp, kx2 = jax.random.split(key, 3)

    params = init_params(kp)

    # Small shape consistent with the module: batch=8, in_features=2.
    B = 8
    x = jax.random.normal(kx, (B, 2), jnp.float32)
    out = jax.block_until_ready(model_a_forward(x, params))
    ref = _ref_forward(x, params)
    assert out.shape == (B, 1), out.shape
    assert jnp.allclose(out, ref, atol=1e-5, rtol=1e-5)

    # Exercise padding + multiple grid steps + multiple inner row-chunks.
    B2 = 2500
    x2 = jax.random.normal(kx2, (B2, 2), jnp.float32)
    out2 = jax.block_until_ready(
        model_a_forward(x2, params, lane_width=128, rows_per_step=16))
    ref2 = _ref_forward(x2, params)
    assert out2.shape == (B2, 1), out2.shape
    assert jnp.allclose(out2, ref2, atol=1e-5, rtol=1e-5)

    print("KERNEL_OK")
</pallas_src>

<mosaic_0001>
module attributes {stable_mosaic.version = 11 : i64} {
  func.func @_mlp_kernel(%arg0: i32, %arg1: memref<65xf32, #tpu.memory_space<smem>>, %arg2: memref<2x8x512xf32, #tpu.memory_space<vmem>>, %arg3: memref<8x512xf32, #tpu.memory_space<vmem>>) attributes {dimension_semantics = [#tpu.dimension_semantics<parallel>], iteration_bounds = array<i64: 1>, scalar_prefetch = 0 : i64, scratch_operands = 0 : i64, tpu.core_type = #tpu.core_type<tc>, window_params = [{transform_indices = @transform_0, window_bounds = array<i64: 65>}, {transform_indices = @transform_1, window_bounds = array<i64: 2, 8, 512>}, {transform_indices = @transform_2, window_bounds = array<i64: 8, 512>}]} {
    %c0 = arith.constant 0 : index
    %0 = memref.load %arg1[%c0] : memref<65xf32, #tpu.memory_space<smem>>
    %c1 = arith.constant 1 : index
    %1 = memref.load %arg1[%c1] : memref<65xf32, #tpu.memory_space<smem>>
    %c2 = arith.constant 2 : index
    %2 = memref.load %arg1[%c2] : memref<65xf32, #tpu.memory_space<smem>>
    %c3 = arith.constant 3 : index
    %3 = memref.load %arg1[%c3] : memref<65xf32, #tpu.memory_space<smem>>
    %c4 = arith.constant 4 : index
    %4 = memref.load %arg1[%c4] : memref<65xf32, #tpu.memory_space<smem>>
    %c5 = arith.constant 5 : index
    %5 = memref.load %arg1[%c5] : memref<65xf32, #tpu.memory_space<smem>>
    %c6 = arith.constant 6 : index
    %6 = memref.load %arg1[%c6] : memref<65xf32, #tpu.memory_space<smem>>
    %c7 = arith.constant 7 : index
    %7 = memref.load %arg1[%c7] : memref<65xf32, #tpu.memory_space<smem>>
    %c8 = arith.constant 8 : index
    %8 = memref.load %arg1[%c8] : memref<65xf32, #tpu.memory_space<smem>>
    %c9 = arith.constant 9 : index
    %9 = memref.load %arg1[%c9] : memref<65xf32, #tpu.memory_space<smem>>
    %c10 = arith.constant 10 : index
    %10 = memref.load %arg1[%c10] : memref<65xf32, #tpu.memory_space<smem>>
    %c11 = arith.constant 11 : index
    %11 = memref.load %arg1[%c11] : memref<65xf32, #tpu.memory_space<smem>>
    %c12 = arith.constant 12 : index
    %12 = memref.load %arg1[%c12] : memref<65xf32, #tpu.memory_space<smem>>
    %c13 = arith.constant 13 : index
    %13 = memref.load %arg1[%c13] : memref<65xf32, #tpu.memory_space<smem>>
    %c14 = arith.constant 14 : index
    %14 = memref.load %arg1[%c14] : memref<65xf32, #tpu.memory_space<smem>>
    %c15 = arith.constant 15 : index
    %15 = memref.load %arg1[%c15] : memref<65xf32, #tpu.memory_space<smem>>
    %c16 = arith.constant 16 : index
    %16 = memref.load %arg1[%c16] : memref<65xf32, #tpu.memory_space<smem>>
    %c17 = arith.constant 17 : index
    %17 = memref.load %arg1[%c17] : memref<65xf32, #tpu.memory_space<smem>>
    %c18 = arith.constant 18 : index
    %18 = memref.load %arg1[%c18] : memref<65xf32, #tpu.memory_space<smem>>
    %c19 = arith.constant 19 : index
    %19 = memref.load %arg1[%c19] : memref<65xf32, #tpu.memory_space<smem>>
    %c20 = arith.constant 20 : index
    %20 = memref.load %arg1[%c20] : memref<65xf32, #tpu.memory_space<smem>>
    %c21 = arith.constant 21 : index
    %21 = memref.load %arg1[%c21] : memref<65xf32, #tpu.memory_space<smem>>
    %c22 = arith.constant 22 : index
    %22 = memref.load %arg1[%c22] : memref<65xf32, #tpu.memory_space<smem>>
    %c23 = arith.constant 23 : index
    %23 = memref.load %arg1[%c23] : memref<65xf32, #tpu.memory_space<smem>>
    %c24 = arith.constant 24 : index
    %24 = memref.load %arg1[%c24] : memref<65xf32, #tpu.memory_space<smem>>
    %c25 = arith.constant 25 : index
    %25 = memref.load %arg1[%c25] : memref<65xf32, #tpu.memory_space<smem>>
    %c26 = arith.constant 26 : index
    %26 = memref.load %arg1[%c26] : memref<65xf32, #tpu.memory_space<smem>>
    %c27 = arith.constant 27 : index
    %27 = memref.load %arg1[%c27] : memref<65xf32, #tpu.memory_space<smem>>
    %c28 = arith.constant 28 : index
    %28 = memref.load %arg1[%c28] : memref<65xf32, #tpu.memory_space<smem>>
    %c29 = arith.constant 29 : index
    %29 = memref.load %arg1[%c29] : memref<65xf32, #tpu.memory_space<smem>>
    %c30 = arith.constant 30 : index
    %30 = memref.load %arg1[%c30] : memref<65xf32, #tpu.memory_space<smem>>
    %c31 = arith.constant 31 : index
    %31 = memref.load %arg1[%c31] : memref<65xf32, #tpu.memory_space<smem>>
    %c32 = arith.constant 32 : index
    %32 = memref.load %arg1[%c32] : memref<65xf32, #tpu.memory_space<smem>>
    %c33 = arith.constant 33 : index
    %33 = memref.load %arg1[%c33] : memref<65xf32, #tpu.memory_space<smem>>
    %c34 = arith.constant 34 : index
    %34 = memref.load %arg1[%c34] : memref<65xf32, #tpu.memory_space<smem>>
    %c35 = arith.constant 35 : index
    %35 = memref.load %arg1[%c35] : memref<65xf32, #tpu.memory_space<smem>>
    %c36 = arith.constant 36 : index
    %36 = memref.load %arg1[%c36] : memref<65xf32, #tpu.memory_space<smem>>
    %c37 = arith.constant 37 : index
    %37 = memref.load %arg1[%c37] : memref<65xf32, #tpu.memory_space<smem>>
    %c38 = arith.constant 38 : index
    %38 = memref.load %arg1[%c38] : memref<65xf32, #tpu.memory_space<smem>>
    %c39 = arith.constant 39 : index
    %39 = memref.load %arg1[%c39] : memref<65xf32, #tpu.memory_space<smem>>
    %c40 = arith.constant 40 : index
    %40 = memref.load %arg1[%c40] : memref<65xf32, #tpu.memory_space<smem>>
    %c41 = arith.constant 41 : index
    %41 = memref.load %arg1[%c41] : memref<65xf32, #tpu.memory_space<smem>>
    %c42 = arith.constant 42 : index
    %42 = memref.load %arg1[%c42] : memref<65xf32, #tpu.memory_space<smem>>
    %c43 = arith.constant 43 : index
    %43 = memref.load %arg1[%c43] : memref<65xf32, #tpu.memory_space<smem>>
    %c44 = arith.constant 44 : index
    %44 = memref.load %arg1[%c44] : memref<65xf32, #tpu.memory_space<smem>>
    %c45 = arith.constant 45 : index
    %45 = memref.load %arg1[%c45] : memref<65xf32, #tpu.memory_space<smem>>
    %c46 = arith.constant 46 : index
    %46 = memref.load %arg1[%c46] : memref<65xf32, #tpu.memory_space<smem>>
    %c47 = arith.constant 47 : index
    %47 = memref.load %arg1[%c47] : memref<65xf32, #tpu.memory_space<smem>>
    %c48 = arith.constant 48 : index
    %48 = memref.load %arg1[%c48] : memref<65xf32, #tpu.memory_space<smem>>
    %c49 = arith.constant 49 : index
    %49 = memref.load %arg1[%c49] : memref<65xf32, #tpu.memory_space<smem>>
    %c50 = arith.constant 50 : index
    %50 = memref.load %arg1[%c50] : memref<65xf32, #tpu.memory_space<smem>>
    %c51 = arith.constant 51 : index
    %51 = memref.load %arg1[%c51] : memref<65xf32, #tpu.memory_space<smem>>
    %c52 = arith.constant 52 : index
    %52 = memref.load %arg1[%c52] : memref<65xf32, #tpu.memory_space<smem>>
    %c53 = arith.constant 53 : index
    %53 = memref.load %arg1[%c53] : memref<65xf32, #tpu.memory_space<smem>>
    %c54 = arith.constant 54 : index
    %54 = memref.load %arg1[%c54] : memref<65xf32, #tpu.memory_space<smem>>
    %c55 = arith.constant 55 : index
    %55 = memref.load %arg1[%c55] : memref<65xf32, #tpu.memory_space<smem>>
    %c56 = arith.constant 56 : index
    %56 = memref.load %arg1[%c56] : memref<65xf32, #tpu.memory_space<smem>>
    %c57 = arith.constant 57 : index
    %57 = memref.load %arg1[%c57] : memref<65xf32, #tpu.memory_space<smem>>
    %c58 = arith.constant 58 : index
    %58 = memref.load %arg1[%c58] : memref<65xf32, #tpu.memory_space<smem>>
    %c59 = arith.constant 59 : index
    %59 = memref.load %arg1[%c59] : memref<65xf32, #tpu.memory_space<smem>>
    %c60 = arith.constant 60 : index
    %60 = memref.load %arg1[%c60] : memref<65xf32, #tpu.memory_space<smem>>
    %c61 = arith.constant 61 : index
    %61 = memref.load %arg1[%c61] : memref<65xf32, #tpu.memory_space<smem>>
    %c62 = arith.constant 62 : index
    %62 = memref.load %arg1[%c62] : memref<65xf32, #tpu.memory_space<smem>>
    %c63 = arith.constant 63 : index
    %63 = memref.load %arg1[%c63] : memref<65xf32, #tpu.memory_space<smem>>
    %c64 = arith.constant 64 : index
    %64 = memref.load %arg1[%c64] : memref<65xf32, #tpu.memory_space<smem>>
    %c0_i32 = arith.constant 0 : i32
    %c8_i32 = arith.constant 8 : i32
    %65 = arith.muli %c0_i32, %c8_i32 : i32
    %66 = tpu.assume_multiple %65, 8 : i32
    %c0_0 = arith.constant 0 : index
    %67 = arith.index_cast %66 : i32 to index
    %c0_1 = arith.constant 0 : index
    %68 = vector.load %arg2[%c0_0, %67, %c0_1] : memref<2x8x512xf32, #tpu.memory_space<vmem>>, vector<1x8x512xf32>
    %69 = vector.shape_cast %68 : vector<1x8x512xf32> to vector<8x512xf32>
    %c1_2 = arith.constant 1 : index
    %70 = arith.index_cast %66 : i32 to index
    %c0_3 = arith.constant 0 : index
    %71 = vector.load %arg2[%c1_2, %70, %c0_3] : memref<2x8x512xf32, #tpu.memory_space<vmem>>, vector<1x8x512xf32>
    %72 = vector.shape_cast %71 : vector<1x8x512xf32> to vector<8x512xf32>
    %73 = vector.broadcast %0 : f32 to vector<8x512xf32>
    %74 = arith.mulf %69, %73 : vector<8x512xf32>
    %75 = vector.broadcast %1 : f32 to vector<8x512xf32>
    %76 = arith.mulf %72, %75 : vector<8x512xf32>
    %77 = arith.addf %74, %76 : vector<8x512xf32>
    %78 = vector.broadcast %16 : f32 to vector<8x512xf32>
    %79 = arith.addf %77, %78 : vector<8x512xf32>
    %cst = arith.constant 0.000000e+00 : f32
    %80 = vector.broadcast %cst : f32 to vector<8x512xf32>
    %81 = arith.maximumf %79, %80 : vector<8x512xf32>
    %82 = vector.broadcast %24 : f32 to vector<8x512xf32>
    %83 = arith.mulf %81, %82 : vector<8x512xf32>
    %84 = vector.broadcast %32 : f32 to vector<8x512xf32>
    %85 = arith.mulf %81, %84 : vector<8x512xf32>
    %86 = vector.broadcast %40 : f32 to vector<8x512xf32>
    %87 = arith.mulf %81, %86 : vector<8x512xf32>
    %88 = vector.broadcast %48 : f32 to vector<8x512xf32>
    %89 = arith.mulf %81, %88 : vector<8x512xf32>
    %90 = vector.broadcast %2 : f32 to vector<8x512xf32>
    %91 = arith.mulf %69, %90 : vector<8x512xf32>
    %92 = vector.broadcast %3 : f32 to vector<8x512xf32>
    %93 = arith.mulf %72, %92 : vector<8x512xf32>
    %94 = arith.addf %91, %93 : vector<8x512xf32>
    %95 = vector.broadcast %17 : f32 to vector<8x512xf32>
    %96 = arith.addf %94, %95 : vector<8x512xf32>
    %cst_4 = arith.constant 0.000000e+00 : f32
    %97 = vector.broadcast %cst_4 : f32 to vector<8x512xf32>
    %98 = arith.maximumf %96, %97 : vector<8x512xf32>
    %99 = vector.broadcast %25 : f32 to vector<8x512xf32>
    %100 = arith.mulf %98, %99 : vector<8x512xf32>
    %101 = arith.addf %83, %100 : vector<8x512xf32>
    %102 = vector.broadcast %33 : f32 to vector<8x512xf32>
    %103 = arith.mulf %98, %102 : vector<8x512xf32>
    %104 = arith.addf %85, %103 : vector<8x512xf32>
    %105 = vector.broadcast %41 : f32 to vector<8x512xf32>
    %106 = arith.mulf %98, %105 : vector<8x512xf32>
    %107 = arith.addf %87, %106 : vector<8x512xf32>
    %108 = vector.broadcast %49 : f32 to vector<8x512xf32>
    %109 = arith.mulf %98, %108 : vector<8x512xf32>
    %110 = arith.addf %89, %109 : vector<8x512xf32>
    %111 = vector.broadcast %4 : f32 to vector<8x512xf32>
    %112 = arith.mulf %69, %111 : vector<8x512xf32>
    %113 = vector.broadcast %5 : f32 to vector<8x512xf32>
    %114 = arith.mulf %72, %113 : vector<8x512xf32>
    %115 = arith.addf %112, %114 : vector<8x512xf32>
    %116 = vector.broadcast %18 : f32 to vector<8x512xf32>
    %117 = arith.addf %115, %116 : vector<8x512xf32>
    %cst_5 = arith.constant 0.000000e+00 : f32
    %118 = vector.broadcast %cst_5 : f32 to vector<8x512xf32>
    %119 = arith.maximumf %117, %118 : vector<8x512xf32>
    %120 = vector.broadcast %26 : f32 to vector<8x512xf32>
    %121 = arith.mulf %119, %120 : vector<8x512xf32>
    %122 = arith.addf %101, %121 : vector<8x512xf32>
    %123 = vector.broadcast %34 : f32 to vector<8x512xf32>
    %124 = arith.mulf %119, %123 : vector<8x512xf32>
    %125 = arith.addf %104, %124 : vector<8x512xf32>
    %126 = vector.broadcast %42 : f32 to vector<8x512xf32>
    %127 = arith.mulf %119, %126 : vector<8x512xf32>
    %128 = arith.addf %107, %127 : vector<8x512xf32>
    %129 = vector.broadcast %50 : f32 to vector<8x512xf32>
    %130 = arith.mulf %119, %129 : vector<8x512xf32>
    %131 = arith.addf %110, %130 : vector<8x512xf32>
    %132 = vector.broadcast %6 : f32 to vector<8x512xf32>
    %133 = arith.mulf %69, %132 : vector<8x512xf32>
    %134 = vector.broadcast %7 : f32 to vector<8x512xf32>
    %135 = arith.mulf %72, %134 : vector<8x512xf32>
    %136 = arith.addf %133, %135 : vector<8x512xf32>
    %137 = vector.broadcast %19 : f32 to vector<8x512xf32>
    %138 = arith.addf %136, %137 : vector<8x512xf32>
    %cst_6 = arith.constant 0.000000e+00 : f32
    %139 = vector.broadcast %cst_6 : f32 to vector<8x512xf32>
    %140 = arith.maximumf %138, %139 : vector<8x512xf32>
    %141 = vector.broadcast %27 : f32 to vector<8x512xf32>
    %142 = arith.mulf %140, %141 : vector<8x512xf32>
    %143 = arith.addf %122, %142 : vector<8x512xf32>
    %144 = vector.broadcast %35 : f32 to vector<8x512xf32>
    %145 = arith.mulf %140, %144 : vector<8x512xf32>
    %146 = arith.addf %125, %145 : vector<8x512xf32>
    %147 = vector.broadcast %43 : f32 to vector<8x512xf32>
    %148 = arith.mulf %140, %147 : vector<8x512xf32>
    %149 = arith.addf %128, %148 : vector<8x512xf32>
    %150 = vector.broadcast %51 : f32 to vector<8x512xf32>
    %151 = arith.mulf %140, %150 : vector<8x512xf32>
    %152 = arith.addf %131, %151 : vector<8x512xf32>
    %153 = vector.broadcast %8 : f32 to vector<8x512xf32>
    %154 = arith.mulf %69, %153 : vector<8x512xf32>
    %155 = vector.broadcast %9 : f32 to vector<8x512xf32>
    %156 = arith.mulf %72, %155 : vector<8x512xf32>
    %157 = arith.addf %154, %156 : vector<8x512xf32>
    %158 = vector.broadcast %20 : f32 to vector<8x512xf32>
    %159 = arith.addf %157, %158 : vector<8x512xf32>
    %cst_7 = arith.constant 0.000000e+00 : f32
    %160 = vector.broadcast %cst_7 : f32 to vector<8x512xf32>
    %161 = arith.maximumf %159, %160 : vector<8x512xf32>
    %162 = vector.broadcast %28 : f32 to vector<8x512xf32>
    %163 = arith.mulf %161, %162 : vector<8x512xf32>
    %164 = arith.addf %143, %163 : vector<8x512xf32>
    %165 = vector.broadcast %36 : f32 to vector<8x512xf32>
    %166 = arith.mulf %161, %165 : vector<8x512xf32>
    %167 = arith.addf %146, %166 : vector<8x512xf32>
    %168 = vector.broadcast %44 : f32 to vector<8x512xf32>
    %169 = arith.mulf %161, %168 : vector<8x512xf32>
    %170 = arith.addf %149, %169 : vector<8x512xf32>
    %171 = vector.broadcast %52 : f32 to vector<8x512xf32>
    %172 = arith.mulf %161, %171 : vector<8x512xf32>
    %173 = arith.addf %152, %172 : vector<8x512xf32>
    %174 = vector.broadcast %10 : f32 to vector<8x512xf32>
    %175 = arith.mulf %69, %174 : vector<8x512xf32>
    %176 = vector.broadcast %11 : f32 to vector<8x512xf32>
    %177 = arith.mulf %72, %176 : vector<8x512xf32>
    %178 = arith.addf %175, %177 : vector<8x512xf32>
    %179 = vector.broadcast %21 : f32 to vector<8x512xf32>
    %180 = arith.addf %178, %179 : vector<8x512xf32>
    %cst_8 = arith.constant 0.000000e+00 : f32
    %181 = vector.broadcast %cst_8 : f32 to vector<8x512xf32>
    %182 = arith.maximumf %180, %181 : vector<8x512xf32>
    %183 = vector.broadcast %29 : f32 to vector<8x512xf32>
    %184 = arith.mulf %182, %183 : vector<8x512xf32>
    %185 = arith.addf %164, %184 : vector<8x512xf32>
    %186 = vector.broadcast %37 : f32 to vector<8x512xf32>
    %187 = arith.mulf %182, %186 : vector<8x512xf32>
    %188 = arith.addf %167, %187 : vector<8x512xf32>
    %189 = vector.broadcast %45 : f32 to vector<8x512xf32>
    %190 = arith.mulf %182, %189 : vector<8x512xf32>
    %191 = arith.addf %170, %190 : vector<8x512xf32>
    %192 = vector.broadcast %53 : f32 to vector<8x512xf32>
    %193 = arith.mulf %182, %192 : vector<8x512xf32>
    %194 = arith.addf %173, %193 : vector<8x512xf32>
    %195 = vector.broadcast %12 : f32 to vector<8x512xf32>
    %196 = arith.mulf %69, %195 : vector<8x512xf32>
    %197 = vector.broadcast %13 : f32 to vector<8x512xf32>
    %198 = arith.mulf %72, %197 : vector<8x512xf32>
    %199 = arith.addf %196, %198 : vector<8x512xf32>
    %200 = vector.broadcast %22 : f32 to vector<8x512xf32>
    %201 = arith.addf %199, %200 : vector<8x512xf32>
    %cst_9 = arith.constant 0.000000e+00 : f32
    %202 = vector.broadcast %cst_9 : f32 to vector<8x512xf32>
    %203 = arith.maximumf %201, %202 : vector<8x512xf32>
    %204 = vector.broadcast %30 : f32 to vector<8x512xf32>
    %205 = arith.mulf %203, %204 : vector<8x512xf32>
    %206 = arith.addf %185, %205 : vector<8x512xf32>
    %207 = vector.broadcast %38 : f32 to vector<8x512xf32>
    %208 = arith.mulf %203, %207 : vector<8x512xf32>
    %209 = arith.addf %188, %208 : vector<8x512xf32>
    %210 = vector.broadcast %46 : f32 to vector<8x512xf32>
    %211 = arith.mulf %203, %210 : vector<8x512xf32>
    %212 = arith.addf %191, %211 : vector<8x512xf32>
    %213 = vector.broadcast %54 : f32 to vector<8x512xf32>
    %214 = arith.mulf %203, %213 : vector<8x512xf32>
    %215 = arith.addf %194, %214 : vector<8x512xf32>
    %216 = vector.broadcast %14 : f32 to vector<8x512xf32>
    %217 = arith.mulf %69, %216 : vector<8x512xf32>
    %218 = vector.broadcast %15 : f32 to vector<8x512xf32>
    %219 = arith.mulf %72, %218 : vector<8x512xf32>
    %220 = arith.addf %217, %219 : vector<8x512xf32>
    %221 = vector.broadcast %23 : f32 to vector<8x512xf32>
    %222 = arith.addf %220, %221 : vector<8x512xf32>
    %cst_10 = arith.constant 0.000000e+00 : f32
    %223 = vector.broadcast %cst_10 : f32 to vector<8x512xf32>
    %224 = arith.maximumf %222, %223 : vector<8x512xf32>
    %225 = vector.broadcast %31 : f32 to vector<8x512xf32>
    %226 = arith.mulf %224, %225 : vector<8x512xf32>
    %227 = arith.addf %206, %226 : vector<8x512xf32>
    %228 = vector.broadcast %39 : f32 to vector<8x512xf32>
    %229 = arith.mulf %224, %228 : vector<8x512xf32>
    %230 = arith.addf %209, %229 : vector<8x512xf32>
    %231 = vector.broadcast %47 : f32 to vector<8x512xf32>
    %232 = arith.mulf %224, %231 : vector<8x512xf32>
    %233 = arith.addf %212, %232 : vector<8x512xf32>
    %234 = vector.broadcast %55 : f32 to vector<8x512xf32>
    %235 = arith.mulf %224, %234 : vector<8x512xf32>
    %236 = arith.addf %215, %235 : vector<8x512xf32>
    %237 = vector.broadcast %56 : f32 to vector<8x512xf32>
    %238 = arith.addf %227, %237 : vector<8x512xf32>
    %cst_11 = arith.constant 0.000000e+00 : f32
    %239 = vector.broadcast %cst_11 : f32 to vector<8x512xf32>
    %240 = arith.maximumf %238, %239 : vector<8x512xf32>
    %241 = vector.broadcast %60 : f32 to vector<8x512xf32>
    %242 = arith.mulf %240, %241 : vector<8x512xf32>
    %243 = vector.broadcast %57 : f32 to vector<8x512xf32>
    %244 = arith.addf %230, %243 : vector<8x512xf32>
    %cst_12 = arith.constant 0.000000e+00 : f32
    %245 = vector.broadcast %cst_12 : f32 to vector<8x512xf32>
    %246 = arith.maximumf %244, %245 : vector<8x512xf32>
    %247 = vector.broadcast %61 : f32 to vector<8x512xf32>
    %248 = arith.mulf %246, %247 : vector<8x512xf32>
    %249 = arith.addf %242, %248 : vector<8x512xf32>
    %250 = vector.broadcast %58 : f32 to vector<8x512xf32>
    %251 = arith.addf %233, %250 : vector<8x512xf32>
    %cst_13 = arith.constant 0.000000e+00 : f32
    %252 = vector.broadcast %cst_13 : f32 to vector<8x512xf32>
    %253 = arith.maximumf %251, %252 : vector<8x512xf32>
    %254 = vector.broadcast %62 : f32 to vector<8x512xf32>
    %255 = arith.mulf %253, %254 : vector<8x512xf32>
    %256 = arith.addf %249, %255 : vector<8x512xf32>
    %257 = vector.broadcast %59 : f32 to vector<8x512xf32>
    %258 = arith.addf %236, %257 : vector<8x512xf32>
    %cst_14 = arith.constant 0.000000e+00 : f32
    %259 = vector.broadcast %cst_14 : f32 to vector<8x512xf32>
    %260 = arith.maximumf %258, %259 : vector<8x512xf32>
    %261 = vector.broadcast %63 : f32 to vector<8x512xf32>
    %262 = arith.mulf %260, %261 : vector<8x512xf32>
    %263 = arith.addf %256, %262 : vector<8x512xf32>
    %264 = vector.broadcast %64 : f32 to vector<8x512xf32>
    %265 = arith.addf %263, %264 : vector<8x512xf32>
    %266 = arith.index_cast %66 : i32 to index
    %c0_15 = arith.constant 0 : index
    %267 = vector.load %arg3[%266, %c0_15] : memref<8x512xf32, #tpu.memory_space<vmem>>, vector<8x512xf32>
    tpu.vector_store %arg3[%266, %c0_15], %265 {strides = array<i32>} : memref<8x512xf32, #tpu.memory_space<vmem>>, vector<8x512xf32>,
    %c1_i32 = arith.constant 1 : i32
    return
  }
  func.func @transform_0(%arg0: i32) -> i32 {
    %c0_i32 = arith.constant 0 : i32
    %c0_i32_0 = arith.constant 0 : i32
    return %c0_i32 : i32
  }
  func.func @transform_1(%arg0: i32) -> (i32, i32, i32) {
    %c0_i32 = arith.constant 0 : i32
    %c0_i32_0 = arith.constant 0 : i32
    %c0_i32_1 = arith.constant 0 : i32
    return %c0_i32, %arg0, %c0_i32_0 : i32, i32, i32
  }
  func.func @transform_2(%arg0: i32) -> (i32, i32) {
    %c0_i32 = arith.constant 0 : i32
    %c0_i32_0 = arith.constant 0 : i32
    return %arg0, %c0_i32 : i32, i32
  }
}

</mosaic_0001>

<bundles_post_ra>
// kernel: tpu_custom_call.1
= control target key start
LH: loop header
LB: loop body
LE: loop exit
PB: predicated region body
PF: predicated region fallthrough
CT: control target
= control target key end

     0   :  { %7 = vsyncpa [#allocation5], 0  ;;  %s1350_s0 = inlined_call_operand.hbm [shape: f32[65], index: 0, kind: input, shape index: {}]   ;;  %s1351_s1 = inlined_call_operand.hbm [shape: f32[2,8,512], index: 1, kind: input, shape index: {}]   ;;  %s1352_s2 = inlined_call_operand.hbm [shape: f32[8,512], index: 2, kind: output, shape index: {}]  }
   0x1   :  { %8 = vsyncpa [#allocation3], 0 }
   0x2   :  { %9 = vsyncpa [#allocation4], 0  ;;  %s791_s9 = smov [#allocation2]   ;;  %s792_s12 = smov [#allocation6]  }
   0x3   :  { %17 = dma.hbm_to_smem %s1350_s0, 16, %s791_s9, [#allocation5]  }
   0x4   :  { %s23_s13 = sshll.u32 %s792_s12, 4  ;;  %s24_s13 = int_to_ptr.vmem [resolvable:$true] %s23_s13 }
   0x5   :  { %s753_s14 = scalar_lea.vmem %s24_s13, 1024  ;;  %p758_p1 = scmp.lt.s32.totalorder %s24_s13, %s24_s13 }
   0x6   :  { %p754_p0 = scmp.ne.s32.totalorder %s24_s13, %s753_s14  ;;  %p759_p2 = scmp.lt.s32.totalorder %s753_s14, %s753_s14 }
   0x8   :  { %p760_p3 = por %p759_p2, %p758_p1 }
   0xa   :  { %p761_p4 = pnand %p760_p3, %p754_p0 }
   0xc   :  { %764 = shalt.err (!%p761_p4)
}
   0xd   :  { %s793_s15 = smov 512   ;;  %s794_s16 = smov 32  }
   0xe   :  { %29 = dma.hbm_to_vmem [thread:$0]  %s1351_s1, 1024, %s24_s13, [#allocation3], %s793_s15, %s793_s15, %s794_s16  }
   0xf   :  { %785 = dma.done.wait [#allocation5], 16  }
  0x10   :  { %786 = vsyncadd [#allocation5], 4294967280 }
  0x11   :  { %787 = dma.done.wait [#allocation3], 1024  }
  0x12   :  { %788 = vsyncadd [#allocation3], 4294966272 }
  0x13   :  { %36 = sfence }
  0x14   :  { %s37_s0 = sld [smem:[#allocation2]]  ;;  %v819_v0 = vld [vmem:[#allocation6] sm:$0xff]  ;;  %v823_v1 = vld [vmem:[#allocation6 + $0x8] sm:$0xff]  ;;  %v825_v2 = vld [vmem:[#allocation6 + $0x10] sm:$0xff] }
  0x15   :  { %s668_s19 = sld [smem:[#allocation2 + $0x1]]  ;;  %v827_v3 = vld [vmem:[#allocation6 + $0x18] sm:$0xff]  ;;  %v831_v4 = vld [vmem:[#allocation6 + $0x20] sm:$0xff]  ;;  %v835_v5 = vld [vmem:[#allocation6 + $0x28] sm:$0xff] }
  0x16   :  { %s669_s20 = sld [smem:[#allocation2 + $0x2]]  ;;  %1359 = vst [vmem:[#allocation11_spill] sm:$0xff] %v831_v4  ;;  %1360 = vst [vmem:[#allocation12_spill] sm:$0xff] %v835_v5  ;;  %v837_v6 = vld [vmem:[#allocation6 + $0x30] sm:$0xff]  ;;  %v839_v7 = vld [vmem:[#allocation6 + $0x38] sm:$0xff] }
  0x17   :  { %s817_s21 = sld [smem:[#allocation2 + $0x3]]  ;;  %1361 = vst [vmem:[#allocation13_spill] sm:$0xff] %v837_v6 }
  0x18   :  { %s821_s22 = sld [smem:[#allocation2 + $0x4]] }
  0x19   :  { %s829_s1 = sld [smem:[#allocation2 + $0x5]] }
  0x1a   :  { %s833_s23 = sld [smem:[#allocation2 + $0x6]]  ;;  %v116_v8 = vstv %s37_s0 }
  0x1b   :  { %v117_v9 = vmul.f32 %v116_v8, %v819_v0  ;;  %v118_v10 = vmul.f32 %v116_v8, %v823_v1  ;;  %v119_v11 = vmul.f32 %v116_v8, %v825_v2  ;;  %v120_v12 = vmul.f32 %v116_v8, %v827_v3  ;;  %s845_s24 = sld [smem:[#allocation2 + $0x7]] }
  0x1c   :  { %v121_v13 = vstv %s668_s19  ;;  %v159_v14 = vstv %s669_s20  ;;  %s847_s25 = sld [smem:[#allocation2 + $0x8]] }
  0x1d   :  { %v122_v15 = vmul.f32 %v121_v13, %v831_v4  ;;  %v123_v16 = vmul.f32 %v121_v13, %v835_v5  ;;  %v124_v17 = vmul.f32 %v121_v13, %v837_v6  ;;  %v125_v18 = vmul.f32 %v121_v13, %v839_v7  ;;  %s853_s26 = sld [smem:[#allocation2 + $0x9]] }
  0x1e   :  { %v160_v19 = vmul.f32 %v159_v14, %v819_v0  ;;  %v161_v20 = vmul.f32 %v159_v14, %v823_v1  ;;  %v162_v21 = vmul.f32 %v159_v14, %v825_v2  ;;  %v163_v22 = vmul.f32 %v159_v14, %v827_v3  ;;  %s859_s27 = sld [smem:[#allocation2 + $0xa]] }
  0x1f   :  { %v126_v23 = vadd.f32 %v122_v15, %v117_v9  ;;  %v127_v24 = vadd.f32 %v123_v16, %v118_v10  ;;  %v128_v25 = vadd.f32 %v124_v17, %v119_v11  ;;  %v129_v26 = vadd.f32 %v125_v18, %v120_v12  ;;  %s683_s28 = sld [smem:[#allocation2 + $0x10]] }
  0x20   :  { %v164_v27 = vstv %s817_s21  ;;  %v218_v28 = vstv %s821_s22  ;;  %v223_v29 = vstv %s829_s1  ;;  %v277_v30 = vstv %s833_s23  ;;  %s877_s29 = sld [smem:[#allocation2 + $0x11]] }
  0x21   :  { %v165_v31 = vmul.f32 %v164_v27, %v831_v4  ;;  %v166_v32 = vmul.f32 %v164_v27, %v835_v5  ;;  %v167_v33 = vmul.f32 %v164_v27, %v837_v6  ;;  %v168_v34 = vmul.f32 %v164_v27, %v839_v7  ;;  %s685_s30 = sld [smem:[#allocation2 + $0x12]] }
  0x22   :  { %v219_v35 = vmul.f32 %v218_v28, %v819_v0  ;;  %v220_v36 = vmul.f32 %v218_v28, %v823_v1  ;;  %v221_v37 = vmul.f32 %v218_v28, %v825_v2  ;;  %v222_v38 = vmul.f32 %v218_v28, %v827_v3  ;;  %s907_s3 = sld [smem:[#allocation2 + $0x13]] }
  0x23   :  { %v169_v39 = vadd.f32 %v165_v31, %v160_v19  ;;  %v170_v40 = vadd.f32 %v166_v32, %v161_v20  ;;  %v171_v41 = vadd.f32 %v167_v33, %v162_v21  ;;  %v172_v42 = vadd.f32 %v168_v34, %v163_v22  ;;  %s691_s4 = sld [smem:[#allocation2 + $0x18]] }
  0x24   :  { %v224_v43 = vmul.f32 %v223_v29, %v831_v4  ;;  %v225_v44 = vmul.f32 %v223_v29, %v835_v5  ;;  %v226_v45 = vmul.f32 %v223_v29, %v837_v6  ;;  %v227_v46 = vmul.f32 %v223_v29, %v839_v7  ;;  %s914_s5 = sld [smem:[#allocation2 + $0x19]] }
  0x25   :  { %v278_v47 = vmul.f32 %v277_v30, %v819_v0  ;;  %v279_v48 = vmul.f32 %v277_v30, %v823_v1  ;;  %v280_v49 = vmul.f32 %v277_v30, %v825_v2  ;;  %v281_v50 = vmul.f32 %v277_v30, %v827_v3  ;;  %s693_s6 = sld [smem:[#allocation2 + $0x1a]] }
  0x26   :  { %v228_v51 = vadd.f32 %v224_v43, %v219_v35  ;;  %v229_v52 = vadd.f32 %v225_v44, %v220_v36  ;;  %v230_v53 = vadd.f32 %v226_v45, %v221_v37  ;;  %v231_v54 = vadd.f32 %v227_v46, %v222_v38  ;;  %s940_s7 = sld [smem:[#allocation2 + $0x1b]] }
  0x27   :  { %v282_v55 = vstv %s845_s24  ;;  %v336_v56 = vstv %s847_s25  ;;  %v886_v57 = vstv %s853_s26  ;;  %v889_v58 = vstv %s859_s27  ;;  %s699_s8 = sld [smem:[#allocation2 + $0x20]] }
  0x28   :  { %v283_v59 = vmul.f32 %v282_v55, %v831_v4  ;;  %v284_v60 = vmul.f32 %v282_v55, %v835_v5  ;;  %v285_v61 = vmul.f32 %v282_v55, %v837_v6  ;;  %v286_v62 = vmul.f32 %v282_v55, %v839_v7  ;;  %s956_s9 = sld [smem:[#allocation2 + $0x21]] }
  0x29   :  { %v896_v63 = vmul.f32 %v336_v56, %v819_v0  ;;  %v899_v8 = vmul.f32 %v336_v56, %v823_v1  ;;  %v902_v9 = vmul.f32 %v336_v56, %v825_v2  ;;  %v905_v10 = vmul.f32 %v336_v56, %v827_v3  ;;  %s701_s10 = sld [smem:[#allocation2 + $0x22]] }
  0x2a   :  { %v130_v11 = vstv %s683_s28  ;;  %v287_v12 = vadd.f32 %v283_v59, %v278_v47  ;;  %v288_v13 = vadd.f32 %v284_v60, %v279_v48  ;;  %v289_v14 = vadd.f32 %v285_v61, %v280_v49  ;;  %s970_s11 = sld [smem:[#allocation2 + $0x23]] }
  0x2b   :  { %v131_v15 = vadd.f32 %v130_v11, %v126_v23  ;;  %v132_v16 = vadd.f32 %v130_v11, %v127_v24  ;;  %v133_v17 = vadd.f32 %v130_v11, %v128_v25  ;;  %v134_v18 = vadd.f32 %v130_v11, %v129_v26  ;;  %s707_s12 = sld [smem:[#allocation2 + $0x28]] }
  0x2c   :  { %v173_v19 = vstv %s877_s29  ;;  %v232_v20 = vstv %s685_s30  ;;  %v290_v21 = vadd.f32 %v286_v62, %v281_v50  ;;  %v912_v22 = vmul.f32 %v886_v57, %v831_v4  ;;  %s984_s13 = sld [smem:[#allocation2 + $0x29]] }
  0x2d   :  { %v916_v27 = vmax.f32 %v131_v15, 0.0  ;;  %v918_v28 = vmax.f32 %v132_v16, 0.0  ;;  %v920_v29 = vmax.f32 %v133_v17, 0.0  ;;  %v922_v23 = vmax.f32 %v134_v18, 0.0  ;;  %s709_s14 = sld [smem:[#allocation2 + $0x2a]] }
  0x2e   :  { %v174_v24 = vadd.f32 %v173_v19, %v169_v39  ;;  %v175_v25 = vadd.f32 %v173_v19, %v170_v40  ;;  %v176_v26 = vadd.f32 %v173_v19, %v171_v41  ;;  %v177_v30 = vadd.f32 %v173_v19, %v172_v42  ;;  %s1000_s15 = sld [smem:[#allocation2 + $0x2b]] }
  0x2f   :  { %v233_v31 = vadd.f32 %v232_v20, %v228_v51  ;;  %v234_v32 = vadd.f32 %v232_v20, %v229_v52  ;;  %v235_v33 = vadd.f32 %v232_v20, %v230_v53  ;;  %v236_v34 = vadd.f32 %v232_v20, %v231_v54  ;;  %s715_s16 = sld [smem:[#allocation2 + $0x30]] }
  0x30   :  { %v924_v35 = vmax.f32 %v174_v24, 0.0  ;;  %v926_v36 = vmax.f32 %v175_v25, 0.0  ;;  %v928_v37 = vmax.f32 %v176_v26, 0.0  ;;  %v930_v38 = vmax.f32 %v177_v30, 0.0  ;;  %s1014_s17 = sld [smem:[#allocation2 + $0x31]] }
  0x31   :  { %v932_v43 = vmax.f32 %v233_v31, 0.0  ;;  %v934_v39 = vmax.f32 %v234_v32, 0.0  ;;  %v936_v40 = vmax.f32 %v235_v33, 0.0  ;;  %v938_v41 = vmax.f32 %v236_v34, 0.0  ;;  %s717_s18 = sld [smem:[#allocation2 + $0x32]] }
  0x32   :  { %v139_v42 = vstv %s691_s4  ;;  %v291_v44 = vstv %s907_s3  ;;  %v945_v45 = vmul.f32 %v886_v57, %v835_v5  ;;  %v949_v46 = vmul.f32 %v886_v57, %v837_v6  ;;  %s1030_s0 = sld [smem:[#allocation2 + $0x33]] }
  0x33   :  { %v140_v47 = vmul.f32 %v139_v42, %v916_v27  ;;  %v141_v48 = vmul.f32 %v139_v42, %v918_v28  ;;  %v142_v49 = vmul.f32 %v139_v42, %v920_v29  ;;  %v143_v50 = vmul.f32 %v139_v42, %v922_v23  ;;  %s1037_s19 = sld [smem:[#allocation2 + $0x14]] }
  0x34   :  { %v182_v51 = vstv %s914_s5  ;;  %v241_v52 = vstv %s693_s6  ;;  %v292_v53 = vadd.f32 %v291_v44, %v287_v12  ;;  %v293_v54 = vadd.f32 %v291_v44, %v288_v13  ;;  %s1043_s20 = sld [smem:[#allocation2 + $0x1c]] }
  0x35   :  { %v183_v55 = vmul.f32 %v182_v51, %v924_v35  ;;  %v184_v56 = vmul.f32 %v182_v51, %v926_v36  ;;  %v185_v59 = vmul.f32 %v182_v51, %v928_v37  ;;  %v186_v60 = vmul.f32 %v182_v51, %v930_v38  ;;  %s1048_s21 = sld [smem:[#allocation2 + $0x24]] }
  0x36   :  { %v242_v61 = vmul.f32 %v241_v52, %v932_v43  ;;  %v243_v62 = vmul.f32 %v241_v52, %v934_v39  ;;  %v244_v11 = vmul.f32 %v241_v52, %v936_v40  ;;  %v245_v12 = vmul.f32 %v241_v52, %v938_v41  ;;  %s1054_s22 = sld [smem:[#allocation2 + $0x2c]] }
  0x37   :  { %v187_v13 = vadd.f32 %v183_v55, %v140_v47  ;;  %v188_v15 = vadd.f32 %v184_v56, %v141_v48  ;;  %v189_v16 = vadd.f32 %v185_v59, %v142_v49  ;;  %v190_v17 = vadd.f32 %v186_v60, %v143_v50  ;;  %s1060_s1 = sld [smem:[#allocation2 + $0xb]] }
  0x38   :  { %v294_v18 = vadd.f32 %v291_v44, %v289_v14  ;;  %v295_v19 = vadd.f32 %v291_v44, %v290_v21  ;;  %v966_v20 = vmax.f32 %v292_v53, 0.0  ;;  %v968_v24 = vmax.f32 %v293_v54, 0.0  ;;  %s1062_s23 = sld [smem:[#allocation2 + $0x34]] }
  0x39   :  { %v246_v25 = vadd.f32 %v242_v61, %v187_v13  ;;  %v247_v26 = vadd.f32 %v243_v62, %v188_v15  ;;  %v248_v30 = vadd.f32 %v244_v11, %v189_v16  ;;  %v249_v31 = vadd.f32 %v245_v12, %v190_v17  ;;  %s1070_s24 = sld [smem:[#allocation2 + $0x15]] }
  0x3a   :  { %v144_v32 = vstv %s699_s8  ;;  %v972_v33 = vmax.f32 %v294_v18, 0.0  ;;  %v974_v34 = vmax.f32 %v295_v19, 0.0  ;;  %v300_v42 = vstv %s940_s7  ;;  %s1072_s25 = sld [smem:[#allocation2 + $0x1d]] }
  0x3b   :  { %v145_v14 = vmul.f32 %v144_v32, %v916_v27  ;;  %v146_v21 = vmul.f32 %v144_v32, %v918_v28  ;;  %v147_v44 = vmul.f32 %v144_v32, %v920_v29  ;;  %v148_v47 = vmul.f32 %v144_v32, %v922_v23  ;;  %s1103_s26 = sld [smem:[#allocation2 + $0xc]] }
  0x3c   :  { %v191_v48 = vstv %s956_s9  ;;  %v250_v49 = vstv %s701_s10  ;;  %v301_v50 = vmul.f32 %v300_v42, %v966_v20  ;;  %v302_v51 = vmul.f32 %v300_v42, %v968_v24  ;;  %s1105_s27 = sld [smem:[#allocation2 + $0x25]] }
  0x3d   :  { %v192_v52 = vmul.f32 %v191_v48, %v924_v35  ;;  %v193_v53 = vmul.f32 %v191_v48, %v926_v36  ;;  %v194_v54 = vmul.f32 %v191_v48, %v928_v37  ;;  %v195_v55 = vmul.f32 %v191_v48, %v930_v38  ;;  %s1114_s28 = sld [smem:[#allocation2 + $0x2d]] }
  0x3e   :  { %v251_v56 = vmul.f32 %v250_v49, %v932_v43  ;;  %v252_v59 = vmul.f32 %v250_v49, %v934_v39  ;;  %v253_v60 = vmul.f32 %v250_v49, %v936_v40  ;;  %v254_v61 = vmul.f32 %v250_v49, %v938_v41  ;;  %s1116_s29 = sld [smem:[#allocation2 + $0x35]] }
  0x3f   :  { %v196_v62 = vadd.f32 %v192_v52, %v145_v14  ;;  %v197_v11 = vadd.f32 %v193_v53, %v146_v21  ;;  %v198_v12 = vadd.f32 %v194_v54, %v147_v44  ;;  %v199_v13 = vadd.f32 %v195_v55, %v148_v47  ;;  %s1118_s30 = sld [smem:[#allocation2 + $0xd]] }
  0x40   :  { %v303_v15 = vmul.f32 %v300_v42, %v972_v33  ;;  %v304_v16 = vmul.f32 %v300_v42, %v974_v34  ;;  %v996_v17 = vadd.f32 %v301_v50, %v246_v25  ;;  %v998_v18 = vadd.f32 %v302_v51, %v247_v26  ;;  %s1132_s3 = sld [smem:[#allocation2 + $0x16]] }
  0x41   :  { %v255_v19 = vadd.f32 %v251_v56, %v196_v62  ;;  %v256_v32 = vadd.f32 %v252_v59, %v197_v11  ;;  %v257_v48 = vadd.f32 %v253_v60, %v198_v12  ;;  %v258_v6 = vadd.f32 %v254_v61, %v199_v13  ;;  %s1146_s4 = sld [smem:[#allocation2 + $0x1e]] }
  0x42   :  { %v149_v14 = vstv %s707_s12  ;;  %v1002_v49 = vadd.f32 %v303_v15, %v248_v30  ;;  %v1004_v21 = vadd.f32 %v304_v16, %v249_v31  ;;  %v309_v44 = vstv %s970_s11  ;;  %s1148_s5 = sld [smem:[#allocation2 + $0x26]] }
  0x43   :  { %v150_v47 = vmul.f32 %v149_v14, %v916_v27  ;;  %v151_v25 = vmul.f32 %v149_v14, %v918_v28  ;;  %v152_v42 = vmul.f32 %v149_v14, %v920_v29  ;;  %v153_v26 = vmul.f32 %v149_v14, %v922_v23  ;;  %s1190_s6 = sld [smem:[#allocation2 + $0xe]] }
  0x44   :  { %1362 = vst [vmem:[#allocation14_spill] sm:$0xff] %v1002_v49  ;;  %1363 = vst [vmem:[#allocation15_spill] sm:$0xff] %v1004_v21  ;;  %v200_v50 = vstv %s984_s13  ;;  %v259_v51 = vstv %s709_s14  ;;  %v310_v52 = vmul.f32 %v309_v44, %v966_v20  ;;  %v311_v53 = vmul.f32 %v309_v44, %v968_v24  ;;  %s1192_s7 = sld [smem:[#allocation2 + $0xf]] }
  0x45   :  { %v201_v30 = vmul.f32 %v200_v50, %v924_v35  ;;  %v202_v31 = vmul.f32 %v200_v50, %v926_v36  ;;  %v203_v54 = vmul.f32 %v200_v50, %v928_v37  ;;  %v204_v55 = vmul.f32 %v200_v50, %v930_v38  ;;  %s1198_s8 = sld [smem:[#allocation2 + $0x2e]] }
  0x46   :  { %v260_v56 = vmul.f32 %v259_v51, %v932_v43  ;;  %v261_v59 = vmul.f32 %v259_v51, %v934_v39  ;;  %v262_v60 = vmul.f32 %v259_v51, %v936_v40  ;;  %v263_v61 = vmul.f32 %v259_v51, %v938_v41  ;;  %s1204_s9 = sld [smem:[#allocation2 + $0x36]] }
  0x47   :  { %v205_v62 = vadd.f32 %v201_v30, %v150_v47  ;;  %v206_v11 = vadd.f32 %v202_v31, %v151_v25  ;;  %v207_v12 = vadd.f32 %v203_v54, %v152_v42  ;;  %v208_v13 = vadd.f32 %v204_v55, %v153_v26  ;;  %s1254_s10 = sld [smem:[#allocation2 + $0x17]] }
  0x48   :  { %v312_v15 = vmul.f32 %v309_v44, %v972_v33  ;;  %v313_v16 = vmul.f32 %v309_v44, %v974_v34  ;;  %v1026_v14 = vadd.f32 %v310_v52, %v255_v19  ;;  %v1028_v50 = vadd.f32 %v311_v53, %v256_v32  ;;  %s1256_s11 = sld [smem:[#allocation2 + $0x1f]] }
  0x49   :  { %v264_v5 = vadd.f32 %v260_v56, %v205_v62  ;;  %v265_v4 = vadd.f32 %v261_v59, %v206_v11  ;;  %v266_v21 = vadd.f32 %v262_v60, %v207_v12  ;;  %v267_v49 = vadd.f32 %v263_v61, %v208_v13  ;;  %s1262_s12 = sld [smem:[#allocation2 + $0x27]] }
  0x4a   :  { %v154_v47 = vstv %s715_s16  ;;  %v1032_v51 = vadd.f32 %v312_v15, %v257_v48  ;;  %v1034_v25 = vadd.f32 %v313_v16, %v258_v6  ;;  %v318_v42 = vstv %s1000_s15  ;;  %s1264_s13 = sld [smem:[#allocation2 + $0x2f]] }
  0x4b   :  { %v155_v19 = vmul.f32 %v154_v47, %v916_v27  ;;  %v156_v32 = vmul.f32 %v154_v47, %v918_v28  ;;  %v157_v44 = vmul.f32 %v154_v47, %v920_v29  ;;  %v158_v26 = vmul.f32 %v154_v47, %v922_v23  ;;  %s1270_s14 = sld [smem:[#allocation2 + $0x37]] }
  0x4c   :  { %v209_v52 = vstv %s1014_s17  ;;  %v268_v53 = vstv %s717_s18  ;;  %v319_v48 = vmul.f32 %v318_v42, %v966_v20  ;;  %v320_v6 = vmul.f32 %v318_v42, %v968_v24  ;;  %s1272_s15 = sld [smem:[#allocation2 + $0x38]] }
  0x4d   :  { %v210_v30 = vmul.f32 %v209_v52, %v924_v35  ;;  %v211_v27 = vmul.f32 %v209_v52, %v926_v36  ;;  %v212_v28 = vmul.f32 %v209_v52, %v928_v37  ;;  %v213_v29 = vmul.f32 %v209_v52, %v930_v38  ;;  %s1278_s16 = sld [smem:[#allocation2 + $0x39]] }
  0x4e   :  { %v269_v23 = vmul.f32 %v268_v53, %v932_v43  ;;  %v270_v31 = vmul.f32 %v268_v53, %v934_v39  ;;  %v271_v54 = vmul.f32 %v268_v53, %v936_v40  ;;  %v272_v55 = vmul.f32 %v268_v53, %v938_v41  ;;  %s1284_s17 = sld [smem:[#allocation2 + $0x3a]] }
  0x4f   :  { %v214_v56 = vadd.f32 %v210_v30, %v155_v19  ;;  %v215_v35 = vadd.f32 %v211_v27, %v156_v32  ;;  %v216_v36 = vadd.f32 %v212_v28, %v157_v44  ;;  %v217_v59 = vadd.f32 %v213_v29, %v158_v26  ;;  %s1290_s18 = sld [smem:[#allocation2 + $0x3b]] }
  0x50   :  { %v321_v37 = vmul.f32 %v318_v42, %v972_v33  ;;  %v322_v38 = vmul.f32 %v318_v42, %v974_v34  ;;  %v1066_v43 = vadd.f32 %v319_v48, %v264_v5  ;;  %v1068_v39 = vadd.f32 %v320_v6, %v265_v4 }
  0x51   :  { %v273_v40 = vadd.f32 %v269_v23, %v214_v56  ;;  %v274_v41 = vadd.f32 %v270_v31, %v215_v35  ;;  %v275_v60 = vadd.f32 %v271_v54, %v216_v36  ;;  %v276_v61 = vadd.f32 %v272_v55, %v217_v59 }
  0x52   :  { %v1074_v62 = vadd.f32 %v321_v37, %v266_v21  ;;  %v1076_v11 = vadd.f32 %v322_v38, %v267_v49  ;;  %v327_v12 = vstv %s1030_s0  ;;  %v345_v4 = vmul.f32 %v886_v57, %v839_v7  ;;  %v1364_v38 = vld [vmem:[#allocation14_spill] sm:$0xff]  ;;  %s1296_s0 = sld [smem:[#allocation2 + $0x3c]] }
  0x53   :  { %v328_v5 = vmul.f32 %v327_v12, %v966_v20  ;;  %v329_v13 = vmul.f32 %v327_v12, %v968_v24  ;;  %v330_v15 = vmul.f32 %v327_v12, %v972_v33  ;;  %v331_v16 = vmul.f32 %v327_v12, %v974_v34 }
  0x54   :  { %v346_v21 = vadd.f32 %v912_v22, %v896_v63  ;;  %v347_v49 = vadd.f32 %v945_v45, %v899_v8  ;;  %v348_v47 = vadd.f32 %v949_v46, %v902_v9  ;;  %v349_v57 = vadd.f32 %v345_v4, %v905_v10 }
  0x55   :  { %v332_v42 = vadd.f32 %v328_v5, %v273_v40  ;;  %v333_v20 = vadd.f32 %v329_v13, %v274_v41  ;;  %v334_v19 = vadd.f32 %v330_v15, %v275_v60  ;;  %v335_v24 = vadd.f32 %v331_v16, %v276_v61  ;;  %v1365_v41 = vld [vmem:[#allocation15_spill] sm:$0xff] }
  0x56   :  { %v350_v32 = vstv %s1037_s19  ;;  %v359_v33 = vstv %s1043_s20  ;;  %v368_v44 = vstv %s1048_s21  ;;  %v377_v34 = vstv %s1054_s22  ;;  %s1302_s19 = sld [smem:[#allocation2 + $0x3d]] }
  0x57   :  { %v351_v26 = vadd.f32 %v350_v32, %v346_v21  ;;  %v352_v63 = vadd.f32 %v350_v32, %v347_v49  ;;  %v353_v22 = vadd.f32 %v350_v32, %v348_v47  ;;  %v354_v8 = vadd.f32 %v350_v32, %v349_v57  ;;  %s1304_s20 = sld [smem:[#allocation2 + $0x3e]] }
  0x58   :  { %v386_v45 = vstv %s1062_s23  ;;  %v396_v9 = vmul.f32 %v889_v58, %v819_v0  ;;  %v397_v10 = vmul.f32 %v889_v58, %v823_v1  ;;  %v398_v46 = vmul.f32 %v889_v58, %v825_v2  ;;  %s1332_s21 = sld [smem:[#allocation2 + $0x3f]] }
  0x59   :  { %v355_v52 = vmax.f32 %v351_v26, 0.0  ;;  %v356_v53 = vmax.f32 %v352_v63, 0.0  ;;  %v357_v48 = vmax.f32 %v353_v22, 0.0  ;;  %v358_v6 = vmax.f32 %v354_v8, 0.0  ;;  %v1367_v26 = vld [vmem:[#allocation12_spill] sm:$0xff]  ;;  %s731_s22 = sld [smem:[#allocation2 + $0x40]] }
  0x5a   :  { %v399_v30 = vmul.f32 %v889_v58, %v827_v3  ;;  %v400_v27 = vstv %s1060_s1  ;;  %v409_v28 = vstv %s1070_s24  ;;  %v1112_v29 = vstv %s1072_s25  ;;  %s795_s1 = smov [#allocation7]  }
  0x5b   :  { %v360_v23 = vmul.f32 %v359_v33, %v355_v52  ;;  %v361_v31 = vmul.f32 %v359_v33, %v356_v53  ;;  %v362_v54 = vmul.f32 %v359_v33, %v357_v48  ;;  %v363_v55 = vmul.f32 %v359_v33, %v358_v6  ;;  %s657_s23 = sshll.u32 %s795_s1, 4  ;;  %s658_s23 = int_to_ptr.vmem [resolvable:$true] %s657_s23 }
  0x5c   :  { %v369_v56 = vmul.f32 %v368_v44, %v355_v52  ;;  %v370_v35 = vmul.f32 %v368_v44, %v356_v53  ;;  %v371_v36 = vmul.f32 %v368_v44, %v357_v48  ;;  %v372_v59 = vmul.f32 %v368_v44, %v358_v6  ;;  %s765_s24 = scalar_lea.vmem %s658_s23, 512  ;;  %p770_p6 = scmp.lt.s32.totalorder %s658_s23, %s658_s23 }
  0x5d   :  { %v1121_v58 = vadd.f32 %v360_v23, %v996_v17  ;;  %v1124_v37 = vadd.f32 %v361_v31, %v998_v18  ;;  %v1127_v40 = vadd.f32 %v362_v54, %v1364_v38  ;;  %v1130_v60 = vadd.f32 %v363_v55, %v1365_v41  ;;  %p766_p5 = scmp.ne.s32.totalorder %s658_s23, %s765_s24  ;;  %p771_p7 = scmp.lt.s32.totalorder %s765_s24, %s765_s24 }
  0x5e   :  { %v1135_v61 = vadd.f32 %v369_v56, %v1026_v14  ;;  %v1138_v12 = vadd.f32 %v370_v35, %v1028_v50  ;;  %v1141_v17 = vadd.f32 %v371_v36, %v1032_v51  ;;  %v1144_v18 = vadd.f32 %v372_v59, %v1034_v25 }
  0x5f   :  { %v378_v4 = vmul.f32 %v377_v34, %v355_v52  ;;  %v379_v5 = vmul.f32 %v377_v34, %v356_v53  ;;  %v380_v13 = vmul.f32 %v377_v34, %v357_v48  ;;  %v381_v15 = vmul.f32 %v377_v34, %v358_v6  ;;  %v1366_v34 = vld [vmem:[#allocation11_spill] sm:$0xff]  ;;  %p772_p8 = por %p771_p7, %p770_p6 }
  0x60   :  { %v387_v16 = vmul.f32 %v386_v45, %v355_v52  ;;  %v388_v14 = vmul.f32 %v386_v45, %v356_v53  ;;  %v389_v50 = vmul.f32 %v386_v45, %v357_v48  ;;  %v390_v21 = vmul.f32 %v386_v45, %v358_v6 }
  0x61   :  { %v1151_v51 = vadd.f32 %v378_v4, %v1066_v43  ;;  %v1154_v25 = vadd.f32 %v379_v5, %v1068_v39  ;;  %v1157_v49 = vadd.f32 %v380_v13, %v1074_v62  ;;  %v1160_v47 = vadd.f32 %v381_v15, %v1076_v11  ;;  %v1368_v39 = vld [vmem:[#allocation13_spill] sm:$0xff]  ;;  %p773_p9 = pnand %p772_p8, %p766_p5 }
  0x62   :  { %v1162_v57 = vadd.f32 %v387_v16, %v332_v42  ;;  %v1164_v32 = vadd.f32 %v388_v14, %v333_v20  ;;  %v1166_v33 = vadd.f32 %v389_v50, %v334_v19  ;;  %v1168_v44 = vadd.f32 %v390_v21, %v335_v24 }
  0x63   :  { %v401_v43 = vmul.f32 %v400_v27, %v1366_v34  ;;  %v402_v63 = vmul.f32 %v400_v27, %v1367_v26  ;;  %v403_v22 = vmul.f32 %v400_v27, %v1368_v39  ;;  %v404_v62 = vmul.f32 %v400_v27, %v839_v7 }
  0x64   :  { %v427_v8 = vstv %s1105_s27  ;;  %v436_v11 = vstv %s1114_s28  ;;  %v445_v42 = vstv %s1116_s29  ;;  %v454_v20 = vstv %s1103_s26 }
  0x65   :  { %v405_v19 = vadd.f32 %v401_v43, %v396_v9  ;;  %v406_v45 = vadd.f32 %v402_v63, %v397_v10  ;;  %v407_v24 = vadd.f32 %v403_v22, %v398_v46  ;;  %v408_v52 = vadd.f32 %v404_v62, %v399_v30 }
  0x66   :  { %v455_v53 = vmul.f32 %v454_v20, %v819_v0  ;;  %v456_v48 = vmul.f32 %v454_v20, %v823_v1  ;;  %v457_v6 = vmul.f32 %v454_v20, %v825_v2  ;;  %v458_v27 = vmul.f32 %v454_v20, %v827_v3 }
  0x67   :  { %v410_v23 = vadd.f32 %v409_v28, %v405_v19  ;;  %v411_v31 = vadd.f32 %v409_v28, %v406_v45  ;;  %v412_v54 = vadd.f32 %v409_v28, %v407_v24  ;;  %v413_v55 = vadd.f32 %v409_v28, %v408_v52 }
  0x68   :  { %v459_v56 = vstv %s1118_s30  ;;  %v468_v35 = vstv %s1132_s3  ;;  %v1185_v36 = vstv %s1146_s4  ;;  %v1188_v9 = vstv %s1148_s5 }
  0x69   :  { %v414_v10 = vmax.f32 %v410_v23, 0.0  ;;  %v415_v46 = vmax.f32 %v411_v31, 0.0  ;;  %v416_v30 = vmax.f32 %v412_v54, 0.0  ;;  %v417_v59 = vmax.f32 %v413_v55, 0.0 }
  0x6a   :  { %v460_v38 = vmul.f32 %v459_v56, %v1366_v34  ;;  %v461_v41 = vmul.f32 %v459_v56, %v1367_v26  ;;  %v462_v28 = vmul.f32 %v459_v56, %v1368_v39  ;;  %v463_v4 = vmul.f32 %v459_v56, %v839_v7 }
  0x6b   :  { %v419_v5 = vmul.f32 %v1112_v29, %v414_v10  ;;  %v420_v13 = vmul.f32 %v1112_v29, %v415_v46  ;;  %v421_v15 = vmul.f32 %v1112_v29, %v416_v30  ;;  %v422_v16 = vmul.f32 %v1112_v29, %v417_v59 }
  0x6c   :  { %v428_v14 = vmul.f32 %v427_v8, %v414_v10  ;;  %v429_v50 = vmul.f32 %v427_v8, %v415_v46  ;;  %v430_v21 = vmul.f32 %v427_v8, %v416_v30  ;;  %v431_v43 = vmul.f32 %v427_v8, %v417_v59 }
  0x6d   :  { %v1207_v63 = vadd.f32 %v419_v5, %v1121_v58  ;;  %v1210_v22 = vadd.f32 %v420_v13, %v1124_v37  ;;  %v1213_v62 = vadd.f32 %v421_v15, %v1127_v40  ;;  %v1216_v20 = vadd.f32 %v422_v16, %v1130_v60 }
  0x6e   :  { %v1219_v29 = vadd.f32 %v428_v14, %v1135_v61  ;;  %v1222_v19 = vadd.f32 %v429_v50, %v1138_v12  ;;  %v1225_v8 = vadd.f32 %v430_v21, %v1141_v17  ;;  %v1228_v58 = vadd.f32 %v431_v43, %v1144_v18 }
  0x6f   :  { %v437_v37 = vmul.f32 %v436_v11, %v414_v10  ;;  %v438_v45 = vmul.f32 %v436_v11, %v415_v46  ;;  %v439_v24 = vmul.f32 %v436_v11, %v416_v30  ;;  %v440_v40 = vmul.f32 %v436_v11, %v417_v59 }
  0x70   :  { %v446_v52 = vmul.f32 %v445_v42, %v414_v10  ;;  %v447_v23 = vmul.f32 %v445_v42, %v415_v46  ;;  %v448_v60 = vmul.f32 %v445_v42, %v416_v30  ;;  %v449_v31 = vmul.f32 %v445_v42, %v417_v59 }
  0x71   :  { %v1231_v61 = vadd.f32 %v437_v37, %v1151_v51  ;;  %v1234_v12 = vadd.f32 %v438_v45, %v1154_v25  ;;  %v1237_v17 = vadd.f32 %v439_v24, %v1157_v49  ;;  %v1240_v18 = vadd.f32 %v440_v40, %v1160_v47 }
  0x72   :  { %v1243_v11 = vadd.f32 %v446_v52, %v1162_v57  ;;  %v1246_v42 = vadd.f32 %v447_v23, %v1164_v32  ;;  %v1249_v51 = vadd.f32 %v448_v60, %v1166_v33  ;;  %v1252_v54 = vadd.f32 %v449_v31, %v1168_v44 }
  0x73   :  { %v464_v25 = vadd.f32 %v460_v38, %v455_v53  ;;  %v465_v49 = vadd.f32 %v461_v41, %v456_v48  ;;  %v466_v55 = vadd.f32 %v462_v28, %v457_v6  ;;  %v467_v56 = vadd.f32 %v463_v4, %v458_v27 }
  0x74   :  { %v495_v47 = vstv %s1198_s8  ;;  %v504_v57 = vstv %s1204_s9  ;;  %v513_v10 = vstv %s1190_s6  ;;  %v518_v46 = vstv %s1192_s7 }
  0x75   :  { %v469_v32 = vadd.f32 %v468_v35, %v464_v25  ;;  %v470_v33 = vadd.f32 %v468_v35, %v465_v49  ;;  %v471_v30 = vadd.f32 %v468_v35, %v466_v55  ;;  %v472_v59 = vadd.f32 %v468_v35, %v467_v56 }
  0x76   :  { %v514_v44 = vmul.f32 %v513_v10, %v819_v0  ;;  %v515_v53 = vmul.f32 %v513_v10, %v823_v1  ;;  %v516_v48 = vmul.f32 %v513_v10, %v825_v2  ;;  %v517_v6 = vmul.f32 %v513_v10, %v827_v3 }
  0x77   :  { %v473_v27 = vmax.f32 %v469_v32, 0.0  ;;  %v474_v38 = vmax.f32 %v470_v33, 0.0  ;;  %v475_v41 = vmax.f32 %v471_v30, 0.0  ;;  %v476_v28 = vmax.f32 %v472_v59, 0.0 }
  0x78   :  { %v519_v35 = vmul.f32 %v518_v46, %v1366_v34  ;;  %v520_v4 = vmul.f32 %v518_v46, %v1367_v26  ;;  %v521_v0 = vmul.f32 %v518_v46, %v1368_v39  ;;  %v522_v1 = vmul.f32 %v518_v46, %v839_v7 }
  0x79   :  { %v478_v2 = vmul.f32 %v1185_v36, %v473_v27  ;;  %v479_v3 = vmul.f32 %v1185_v36, %v474_v38  ;;  %v480_v5 = vmul.f32 %v1185_v36, %v475_v41  ;;  %v481_v13 = vmul.f32 %v1185_v36, %v476_v28 }
  0x7a   :  { %v487_v34 = vmul.f32 %v1188_v9, %v473_v27  ;;  %v488_v26 = vmul.f32 %v1188_v9, %v474_v38  ;;  %v489_v39 = vmul.f32 %v1188_v9, %v475_v41  ;;  %v490_v7 = vmul.f32 %v1188_v9, %v476_v28 }
  0x7b   :  { %v482_v15 = vadd.f32 %v478_v2, %v1207_v63  ;;  %v483_v16 = vadd.f32 %v479_v3, %v1210_v22  ;;  %v484_v14 = vadd.f32 %v480_v5, %v1213_v62  ;;  %v485_v36 = vadd.f32 %v481_v13, %v1216_v20 }
  0x7c   :  { %v491_v50 = vadd.f32 %v487_v34, %v1219_v29  ;;  %v492_v21 = vadd.f32 %v488_v26, %v1222_v19  ;;  %v493_v43 = vadd.f32 %v489_v39, %v1225_v8  ;;  %v494_v9 = vadd.f32 %v490_v7, %v1228_v58 }
  0x7d   :  { %v496_v37 = vmul.f32 %v495_v47, %v473_v27  ;;  %v497_v63 = vmul.f32 %v495_v47, %v474_v38  ;;  %v498_v45 = vmul.f32 %v495_v47, %v475_v41  ;;  %v499_v22 = vmul.f32 %v495_v47, %v476_v28 }
  0x7e   :  { %v505_v62 = vmul.f32 %v504_v57, %v473_v27  ;;  %v506_v20 = vmul.f32 %v504_v57, %v474_v38  ;;  %v507_v24 = vmul.f32 %v504_v57, %v475_v41  ;;  %v508_v29 = vmul.f32 %v504_v57, %v476_v28 }
  0x7f   :  { %v500_v19 = vadd.f32 %v496_v37, %v1231_v61  ;;  %v501_v8 = vadd.f32 %v497_v63, %v1234_v12  ;;  %v502_v58 = vadd.f32 %v498_v45, %v1237_v17  ;;  %v503_v40 = vadd.f32 %v499_v22, %v1240_v18 }
  0x80   :  { %v509_v52 = vadd.f32 %v505_v62, %v1243_v11  ;;  %v510_v23 = vadd.f32 %v506_v20, %v1246_v42  ;;  %v511_v60 = vadd.f32 %v507_v24, %v1249_v51  ;;  %v512_v31 = vadd.f32 %v508_v29, %v1252_v54 }
  0x81   :  { %v523_v25 = vadd.f32 %v519_v35, %v514_v44  ;;  %v524_v61 = vadd.f32 %v520_v4, %v515_v53  ;;  %v525_v49 = vadd.f32 %v521_v0, %v516_v48  ;;  %v526_v12 = vadd.f32 %v522_v1, %v517_v6 }
  0x82   :  { %v527_v55 = vstv %s1254_s10  ;;  %v536_v17 = vstv %s1256_s11  ;;  %v545_v18 = vstv %s1262_s12  ;;  %v554_v11 = vstv %s1264_s13 }
  0x83   :  { %v528_v42 = vadd.f32 %v527_v55, %v523_v25  ;;  %v529_v56 = vadd.f32 %v527_v55, %v524_v61  ;;  %v530_v47 = vadd.f32 %v527_v55, %v525_v49  ;;  %v531_v51 = vadd.f32 %v527_v55, %v526_v12 }
  0x84   :  { %v563_v57 = vstv %s1270_s14  ;;  %v572_v10 = vstv %s1272_s15  ;;  %v581_v54 = vstv %s1296_s0  ;;  %v586_v46 = vstv %s1278_s16 }
  0x85   :  { %v532_v32 = vmax.f32 %v528_v42, 0.0  ;;  %v533_v33 = vmax.f32 %v529_v56, 0.0  ;;  %v534_v30 = vmax.f32 %v530_v47, 0.0  ;;  %v535_v59 = vmax.f32 %v531_v51, 0.0 }
  0x86   :  { %v595_v44 = vstv %s1302_s19  ;;  %v1324_v53 = vstv %s1284_s17  ;;  %v1327_v48 = vstv %s1304_s20  ;;  %v1330_v6 = vstv %s1290_s18 }
  0x87   :  { %v537_v27 = vmul.f32 %v536_v17, %v532_v32  ;;  %v538_v38 = vmul.f32 %v536_v17, %v533_v33  ;;  %v539_v41 = vmul.f32 %v536_v17, %v534_v30  ;;  %v540_v28 = vmul.f32 %v536_v17, %v535_v59 }
  0x88   :  { %v546_v35 = vmul.f32 %v545_v18, %v532_v32  ;;  %v547_v4 = vmul.f32 %v545_v18, %v533_v33  ;;  %v548_v0 = vmul.f32 %v545_v18, %v534_v30  ;;  %v549_v1 = vmul.f32 %v545_v18, %v535_v59 }
  0x89   :  { %v541_v2 = vadd.f32 %v537_v27, %v482_v15  ;;  %v542_v3 = vadd.f32 %v538_v38, %v483_v16  ;;  %v543_v5 = vadd.f32 %v539_v41, %v484_v14  ;;  %v544_v13 = vadd.f32 %v540_v28, %v485_v36 }
  0x8a   :  { %v550_v34 = vadd.f32 %v546_v35, %v491_v50  ;;  %v551_v26 = vadd.f32 %v547_v4, %v492_v21  ;;  %v552_v39 = vadd.f32 %v548_v0, %v493_v43  ;;  %v553_v7 = vadd.f32 %v549_v1, %v494_v9 }
  0x8b   :  { %v555_v37 = vmul.f32 %v554_v11, %v532_v32  ;;  %v556_v63 = vmul.f32 %v554_v11, %v533_v33  ;;  %v557_v45 = vmul.f32 %v554_v11, %v534_v30  ;;  %v558_v22 = vmul.f32 %v554_v11, %v535_v59 }
  0x8c   :  { %v564_v62 = vmul.f32 %v563_v57, %v532_v32  ;;  %v565_v20 = vmul.f32 %v563_v57, %v533_v33  ;;  %v566_v24 = vmul.f32 %v563_v57, %v534_v30  ;;  %v567_v29 = vmul.f32 %v563_v57, %v535_v59 }
  0x8d   :  { %v559_v25 = vadd.f32 %v555_v37, %v500_v19  ;;  %v560_v61 = vadd.f32 %v556_v63, %v501_v8  ;;  %v561_v49 = vadd.f32 %v557_v45, %v502_v58  ;;  %v562_v12 = vadd.f32 %v558_v22, %v503_v40 }
  0x8e   :  { %v568_v15 = vadd.f32 %v564_v62, %v509_v52  ;;  %v569_v16 = vadd.f32 %v565_v20, %v510_v23  ;;  %v570_v14 = vadd.f32 %v566_v24, %v511_v60  ;;  %v571_v36 = vadd.f32 %v567_v29, %v512_v31 }
  0x8f   :  { %v573_v50 = vadd.f32 %v572_v10, %v541_v2  ;;  %v574_v21 = vadd.f32 %v572_v10, %v542_v3  ;;  %v575_v43 = vadd.f32 %v572_v10, %v543_v5  ;;  %v576_v9 = vadd.f32 %v572_v10, %v544_v13 }
  0x90   :  { %v587_v55 = vadd.f32 %v586_v46, %v550_v34  ;;  %v588_v17 = vadd.f32 %v586_v46, %v551_v26  ;;  %v589_v18 = vadd.f32 %v586_v46, %v552_v39  ;;  %v590_v11 = vadd.f32 %v586_v46, %v553_v7 }
  0x91   :  { %v577_v42 = vmax.f32 %v573_v50, 0.0  ;;  %v578_v56 = vmax.f32 %v574_v21, 0.0  ;;  %v579_v47 = vmax.f32 %v575_v43, 0.0  ;;  %v580_v51 = vmax.f32 %v576_v9, 0.0 }
  0x92   :  { %v591_v19 = vmax.f32 %v587_v55, 0.0  ;;  %v592_v8 = vmax.f32 %v588_v17, 0.0  ;;  %v593_v58 = vmax.f32 %v589_v18, 0.0  ;;  %v594_v40 = vmax.f32 %v590_v11, 0.0 }
  0x93   :  { %v582_v52 = vmul.f32 %v581_v54, %v577_v42  ;;  %v583_v23 = vmul.f32 %v581_v54, %v578_v56  ;;  %v584_v60 = vmul.f32 %v581_v54, %v579_v47  ;;  %v585_v31 = vmul.f32 %v581_v54, %v580_v51 }
  0x94   :  { %v596_v57 = vmul.f32 %v595_v44, %v591_v19  ;;  %v597_v10 = vmul.f32 %v595_v44, %v592_v8  ;;  %v598_v32 = vmul.f32 %v595_v44, %v593_v58  ;;  %v599_v33 = vmul.f32 %v595_v44, %v594_v40 }
  0x95   :  { %v605_v46 = vadd.f32 %v1324_v53, %v559_v25  ;;  %v606_v30 = vadd.f32 %v1324_v53, %v560_v61  ;;  %v607_v59 = vadd.f32 %v1324_v53, %v561_v49  ;;  %v608_v27 = vadd.f32 %v1324_v53, %v562_v12 }
  0x96   :  { %v600_v38 = vadd.f32 %v596_v57, %v582_v52  ;;  %v601_v41 = vadd.f32 %v597_v10, %v583_v23  ;;  %v602_v28 = vadd.f32 %v598_v32, %v584_v60  ;;  %v603_v35 = vadd.f32 %v599_v33, %v585_v31 }
  0x97   :  { %v609_v54 = vmax.f32 %v605_v46, 0.0  ;;  %v610_v4 = vmax.f32 %v606_v30, 0.0  ;;  %v611_v0 = vmax.f32 %v607_v59, 0.0  ;;  %v612_v1 = vmax.f32 %v608_v27, 0.0 }
  0x98   :  { %v623_v2 = vadd.f32 %v1330_v6, %v568_v15  ;;  %v624_v44 = vadd.f32 %v1330_v6, %v569_v16  ;;  %v625_v3 = vadd.f32 %v1330_v6, %v570_v14  ;;  %v626_v5 = vadd.f32 %v1330_v6, %v571_v36 }
  0x99   :  { %v614_v53 = vmul.f32 %v1327_v48, %v609_v54  ;;  %v615_v13 = vmul.f32 %v1327_v48, %v610_v4  ;;  %v616_v34 = vmul.f32 %v1327_v48, %v611_v0  ;;  %v617_v26 = vmul.f32 %v1327_v48, %v612_v1 }
  0x9a   :  { %v627_v39 = vmax.f32 %v623_v2, 0.0  ;;  %v628_v7 = vmax.f32 %v624_v44, 0.0  ;;  %v629_v37 = vmax.f32 %v625_v3, 0.0  ;;  %v630_v63 = vmax.f32 %v626_v5, 0.0 }
  0x9b   :  { %v618_v45 = vadd.f32 %v614_v53, %v600_v38  ;;  %v619_v22 = vadd.f32 %v615_v13, %v601_v41  ;;  %v620_v62 = vadd.f32 %v616_v34, %v602_v28  ;;  %v621_v20 = vadd.f32 %v617_v26, %v603_v35 }
  0x9c   :  { %v631_v24 = vstv %s1332_s21  ;;  %v640_v49 = vstv %s731_s22 }
  0x9d   :  { %v632_v29 = vmul.f32 %v631_v24, %v627_v39  ;;  %v633_v25 = vmul.f32 %v631_v24, %v628_v7  ;;  %v634_v6 = vmul.f32 %v631_v24, %v629_v37  ;;  %v635_v61 = vmul.f32 %v631_v24, %v630_v63 }
  0x9f   :  { %v636_v12 = vadd.f32 %v632_v29, %v618_v45  ;;  %v637_v15 = vadd.f32 %v633_v25, %v619_v22  ;;  %v638_v16 = vadd.f32 %v634_v6, %v620_v62  ;;  %v639_v48 = vadd.f32 %v635_v61, %v621_v20 }
  0xa1   :  { %v641_v14 = vadd.f32 %v640_v49, %v636_v12  ;;  %v642_v36 = vadd.f32 %v640_v49, %v637_v15  ;;  %v643_v50 = vadd.f32 %v640_v49, %v638_v16  ;;  %v644_v21 = vadd.f32 %v640_v49, %v639_v48 }
  0xa3   :  { %647 = vst [vmem:[#allocation7] sm:$0xff] %v641_v14  ;;  %648 = vst [vmem:[#allocation7 + $0x8] sm:$0xff] %v642_v36 }
  0xa4   :  { %649 = vst [vmem:[#allocation7 + $0x10] sm:$0xff] %v643_v50  ;;  %650 = vst [vmem:[#allocation7 + $0x18] sm:$0xff] %v644_v21 }
  0xa5   :  { %776 = shalt.err (!%p773_p9)
}
  0xa6   :  { %660 = dma.vmem_to_hbm [thread:$0]  %s658_s23, 512, %s1352_s2, [#allocation4]  }
  0xa7   :  { %789 = dma.done.wait [#allocation4], 512  }
  0xa8   :  { %790 = vsyncadd [#allocation4], 4294966784 }
  0xa9   :  { %664 = vsyncpa [#allocation3], 1 }
  0xaa   :  { %665 = vsyncpa [#allocation4], 1 }
  0xab   :  { %666 = vsyncpa [#allocation5], 1 }

</bundles_post_ra>
